<compile_context>
chip_gen: v6e
topology: v6e:2x2x1
jax: 0.10.0
libtpu: 0.0.40
codegen_flags: <defaults>
</compile_context>

<pallas_src>
import functools

import numpy as np
import jax
import jax.numpy as jnp
from jax.experimental import pallas as pl
from jax.experimental.pallas import tpu as pltpu

# 3x3 tap offsets, enumerated in the same (row-major ky, kx) order as the
# flattened conv weights: tap index t = (dy+1)*3 + (dx+1).
_TAPS = tuple((dy, dx) for dy in (-1, 0, 1) for dx in (-1, 0, 1))


def _border_masks(H, W, dtype):
    """(9, 1, H*W) 0/1 masks selecting in-bounds source pixels for each tap."""
    hh, ww = np.meshgrid(np.arange(H), np.arange(W), indexing='ij')
    rows = []
    for dy, dx in _TAPS:
        valid = ((hh + dy >= 0) & (hh + dy < H) &
                 (ww + dx >= 0) & (ww + dx < W))
        rows.append(valid.reshape(1, H * W))
    return jnp.asarray(np.stack(rows, axis=0), dtype=dtype)


def _token_learner_kernel(x_ref, w_ref, b_ref, m_ref, o_ref, col_ref, *,
                          W, C, HW, n_imgs):
    # x_ref : (BT_BLK, C, HW)   images of this grid step (lane dim = H*W)
    # w_ref : (S, 9*C)          conv weights, tap-major along K
    # b_ref : (S, 1)            conv bias
    # m_ref : (9, 1, HW)        0/1 border masks per tap
    # o_ref : (BT_BLK, C, S)    tokens (transposed to (BT, S, C) in the wrapper)
    # col_ref: (9*C, HW)        im2col scratch, fully rewritten every image
    w = w_ref[...]              # hoisted: loaded once per grid step
    bias = b_ref[...]

    def body(b, carry):
        xi = x_ref[b]                                        # (C, HW)

        # im2col: nine lane-rolled, border-masked copies stacked along K.
        for t, (dy, dx) in enumerate(_TAPS):
            rows = slice(t * C, (t + 1) * C)
            if dy == 0 and dx == 0:
                col_ref[rows, :] = xi
            else:
                shifted = pltpu.roll(xi, (-(dy * W + dx)) % HW, axis=1)
                col_ref[rows, :] = shifted * m_ref[t]

        # Fused conv (K = 9*C) on the MXU, then bias + sigmoid (EUP).
        logits = jnp.dot(w, col_ref[...], preferred_element_type=jnp.float32)
        attn = jax.nn.sigmoid(logits + bias)                 # (S, HW) f32

        # Weighted global max pool, vectorized over (C, S); lane-axis reduce.
        prod = xi[:, None, :] * attn[None, :, :]             # (C, S, HW)
        o_ref[b] = jnp.max(prod, axis=-1).astype(o_ref.dtype)
        return carry

    jax.lax.fori_loop(0, n_imgs, body, None)


def token_learner(x, conv_w, conv_b, *, reduction='stack'):
    """x: [B, T, C, H, W];  conv_w: [3, 3, C, S] (HWIO);  conv_b: [S]."""
    assert reduction in ('stack', 'concat')
    B, T, C, H, W = x.shape
    S = conv_b.shape[0]
    HW = H * W
    BT = B * T

    # Images per grid step: target ~0.5 MiB of input per tile (big tiles
    # amortize per-step overhead and approach the HBM roofline).
    bytes_per_img = C * HW * jnp.dtype(x.dtype).itemsize
    bt_blk = max(1, min(BT, max(8, (512 * 1024) // max(bytes_per_img, 1))))
    bt_pad = pl.cdiv(BT, bt_blk) * bt_blk

    x_r = x.reshape(BT, C, HW)                               # free reshape of NCHW
    if bt_pad != BT:
        x_r = jnp.pad(x_r, ((0, bt_pad - BT), (0, 0), (0, 0)))

    # Conv weights as (S, 9*C); K index = tap*C + c (tap-major, matches _TAPS).
    w2 = jnp.transpose(conv_w.reshape(9 * C, S), (1, 0))
    b2 = conv_b.reshape(S, 1)
    masks = _border_masks(H, W, x.dtype)

    kernel = functools.partial(_token_learner_kernel,
                               W=W, C=C, HW=HW, n_imgs=bt_blk)

    out = pl.pallas_call(
        kernel,
        out_shape=jax.ShapeDtypeStruct((bt_pad, C, S), x.dtype),
        grid_spec=pltpu.PrefetchScalarGridSpec(
            num_scalar_prefetch=0,
            grid=(bt_pad // bt_blk,),
            in_specs=[
                pl.BlockSpec((bt_blk, C, HW), lambda i: (i, 0, 0)),
                pl.BlockSpec((S, 9 * C), lambda i: (0, 0)),
                pl.BlockSpec((S, 1), lambda i: (0, 0)),
                pl.BlockSpec((9, 1, HW), lambda i: (0, 0, 0)),
            ],
            out_specs=pl.BlockSpec((bt_blk, C, S), lambda i: (i, 0, 0)),
            scratch_shapes=[pltpu.VMEM((9 * C, HW), x.dtype)],
        ),
        compiler_params=pltpu.CompilerParams(
            dimension_semantics=("parallel",),
            vmem_limit_bytes=32 * 1024 * 1024),
    )(x_r, w2, b2, masks)                                    # (bt_pad, C, S)

    tokens = jnp.swapaxes(out[:BT], 1, 2)                    # (BT, S, C)
    if reduction == 'stack':
        # '(B T) S C 1 1 -> B T (S C) 1 1'
        return tokens.reshape(B, T, S * C, 1, 1)
    # '(B T) S C 1 1 -> B (T S) C 1 1'
    return tokens.reshape(B, T * S, C, 1, 1)


def _reference(x, conv_w, conv_b, *, reduction='stack'):
    """Pure-JAX reference mirroring the PyTorch forward (H_out=W_out=1)."""
    B, T, C, H, W = x.shape
    S = conv_b.shape[0]
    x_nhwc = jnp.transpose(x.reshape(B * T, C, H, W), (0, 2, 3, 1))
    kmap = jax.lax.conv_general_dilated(
        x_nhwc, conv_w, window_strides=(1, 1), padding='SAME',
        dimension_numbers=('NHWC', 'HWIO', 'NHWC'))          # (BT, H, W, S)
    attn = jax.nn.sigmoid(kmap + conv_b)                     # (BT, H, W, S)
    prod = x_nhwc[:, :, :, None, :] * attn[:, :, :, :, None]  # (BT, H, W, S, C)
    tokens = jnp.max(prod, axis=(1, 2))                      # (BT, S, C)
    if reduction == 'stack':
        return tokens.reshape(B, T, S * C, 1, 1)
    return tokens.reshape(B, T * S, C, 1, 1)


if __name__ == "__main__":
    B, T, C, H, W = 2, 2, 4, 16, 16
    S = 8                      # N_tokens
    # H_out = W_out = 1, as in the original paper.

    key = jax.random.PRNGKey(0)
    kx, kw, kb = jax.random.split(key, 3)
    x = jax.random.normal(kx, (B, T, C, H, W), dtype=jnp.float32)
    # Deterministic synthetic conv parameters (Conv2d(C -> S, 3x3), HWIO).
    conv_w = jax.random.normal(kw, (3, 3, C, S), dtype=jnp.float32) * 0.1
    conv_b = jax.random.normal(kb, (S,), dtype=jnp.float32) * 0.1

    out_stack = jax.block_until_ready(
        token_learner(x, conv_w, conv_b, reduction='stack'))
    out_concat = jax.block_until_ready(
        token_learner(x, conv_w, conv_b, reduction='concat'))

    ref_stack = _reference(x, conv_w, conv_b, reduction='stack')
    ref_concat = _reference(x, conv_w, conv_b, reduction='concat')

    assert out_stack.shape == (B, T, S * C, 1, 1), out_stack.shape
    assert out_concat.shape == (B, T * S, C, 1, 1), out_concat.shape
    np.testing.assert_allclose(np.asarray(out_stack), np.asarray(ref_stack),
                               rtol=1e-4, atol=1e-4)
    np.testing.assert_allclose(np.asarray(out_concat), np.asarray(ref_concat),
                               rtol=1e-4, atol=1e-4)
    print("KERNEL_OK")
</pallas_src>

<mosaic_0001>
module attributes {stable_mosaic.version = 11 : i64} {
  func.func @_token_learner_kernel(%arg0: i32, %arg1: memref<4x4x256xf32, #tpu.memory_space<vmem>>, %arg2: memref<8x36xf32, #tpu.memory_space<vmem>>, %arg3: memref<8x1xf32, #tpu.memory_space<vmem>>, %arg4: memref<9x1x256xf32, #tpu.memory_space<vmem>>, %arg5: memref<4x4x8xf32, #tpu.memory_space<vmem>>, %arg6: memref<36x256xf32, #tpu.memory_space<vmem>>) attributes {dimension_semantics = [#tpu.dimension_semantics<parallel>], iteration_bounds = array<i64: 1>, scalar_prefetch = 0 : i64, scratch_operands = 1 : i64, tpu.core_type = #tpu.core_type<tc>, window_params = [{transform_indices = @transform_0, window_bounds = array<i64: 4, 4, 256>}, {pipeline_mode = #tpu.pipeline_mode<synchronous>, transform_indices = @transform_1, window_bounds = array<i64: 8, 36>}, {pipeline_mode = #tpu.pipeline_mode<synchronous>, transform_indices = @transform_2, window_bounds = array<i64: 8, 1>}, {pipeline_mode = #tpu.pipeline_mode<synchronous>, transform_indices = @transform_3, window_bounds = array<i64: 9, 1, 256>}, {transform_indices = @transform_4, window_bounds = array<i64: 4, 4, 8>}]} {
    %c0 = arith.constant 0 : index
    %c0_0 = arith.constant 0 : index
    %0 = vector.load %arg2[%c0, %c0_0] : memref<8x36xf32, #tpu.memory_space<vmem>>, vector<8x36xf32>
    %c0_1 = arith.constant 0 : index
    %c0_2 = arith.constant 0 : index
    %1 = vector.load %arg3[%c0_1, %c0_2] : memref<8x1xf32, #tpu.memory_space<vmem>>, vector<8x1xf32>
    %c0_i32 = arith.constant 0 : i32
    %c4_i32 = arith.constant 4 : i32
    %2 = arith.addi %c0_i32, %c4_i32 : i32
    %c1_i32 = arith.constant 1 : i32
    scf.for %arg7 = %c0_i32 to %2 step %c1_i32  : i32 {
      %3 = arith.index_cast %arg7 : i32 to index
      %c0_4 = arith.constant 0 : index
      %c0_5 = arith.constant 0 : index
      %4 = vector.load %arg1[%3, %c0_4, %c0_5] : memref<4x4x256xf32, #tpu.memory_space<vmem>>, vector<1x4x256xf32>
      %5 = vector.shape_cast %4 : vector<1x4x256xf32> to vector<4x256xf32>
      %c17_i32 = arith.constant 17 : i32
      %6 = tpu.dynamic_rotate %5 by %c17_i32 dim 1 : vector<4x256xf32>, i32 -> vector<4x256xf32>
      %c0_6 = arith.constant 0 : index
      %c0_7 = arith.constant 0 : index
      %c0_8 = arith.constant 0 : index
      %7 = vector.load %arg4[%c0_6, %c0_7, %c0_8] : memref<9x1x256xf32, #tpu.memory_space<vmem>>, vector<1x1x256xf32>
      %8 = vector.shape_cast %7 : vector<1x1x256xf32> to vector<1x256xf32>
      %9 = vector.broadcast %8 : vector<1x256xf32> to vector<4x256xf32>
      %10 = arith.mulf %6, %9 : vector<4x256xf32>
      %c0_9 = arith.constant 0 : index
      %c0_10 = arith.constant 0 : index
      %11 = vector.load %arg6[%c0_9, %c0_10] : memref<36x256xf32, #tpu.memory_space<vmem>>, vector<4x256xf32>
      tpu.vector_store %arg6[%c0_9, %c0_10], %10 {strides = array<i32>} : memref<36x256xf32, #tpu.memory_space<vmem>>, vector<4x256xf32>,
      %c16_i32 = arith.constant 16 : i32
      %12 = tpu.dynamic_rotate %5 by %c16_i32 dim 1 : vector<4x256xf32>, i32 -> vector<4x256xf32>
      %c1 = arith.constant 1 : index
      %c0_11 = arith.constant 0 : index
      %c0_12 = arith.constant 0 : index
      %13 = vector.load %arg4[%c1, %c0_11, %c0_12] : memref<9x1x256xf32, #tpu.memory_space<vmem>>, vector<1x1x256xf32>
      %14 = vector.shape_cast %13 : vector<1x1x256xf32> to vector<1x256xf32>
      %15 = vector.broadcast %14 : vector<1x256xf32> to vector<4x256xf32>
      %16 = arith.mulf %12, %15 : vector<4x256xf32>
      %c4 = arith.constant 4 : index
      %c0_13 = arith.constant 0 : index
      %17 = vector.load %arg6[%c4, %c0_13] : memref<36x256xf32, #tpu.memory_space<vmem>>, vector<4x256xf32>
      tpu.vector_store %arg6[%c4, %c0_13], %16 {strides = array<i32>} : memref<36x256xf32, #tpu.memory_space<vmem>>, vector<4x256xf32>,
      %c15_i32 = arith.constant 15 : i32
      %18 = tpu.dynamic_rotate %5 by %c15_i32 dim 1 : vector<4x256xf32>, i32 -> vector<4x256xf32>
      %c2 = arith.constant 2 : index
      %c0_14 = arith.constant 0 : index
      %c0_15 = arith.constant 0 : index
      %19 = vector.load %arg4[%c2, %c0_14, %c0_15] : memref<9x1x256xf32, #tpu.memory_space<vmem>>, vector<1x1x256xf32>
      %20 = vector.shape_cast %19 : vector<1x1x256xf32> to vector<1x256xf32>
      %21 = vector.broadcast %20 : vector<1x256xf32> to vector<4x256xf32>
      %22 = arith.mulf %18, %21 : vector<4x256xf32>
      %c8 = arith.constant 8 : index
      %c0_16 = arith.constant 0 : index
      %23 = vector.load %arg6[%c8, %c0_16] : memref<36x256xf32, #tpu.memory_space<vmem>>, vector<4x256xf32>
      tpu.vector_store %arg6[%c8, %c0_16], %22 {strides = array<i32>} : memref<36x256xf32, #tpu.memory_space<vmem>>, vector<4x256xf32>,
      %c1_i32_17 = arith.constant 1 : i32
      %24 = tpu.dynamic_rotate %5 by %c1_i32_17 dim 1 : vector<4x256xf32>, i32 -> vector<4x256xf32>
      %c3 = arith.constant 3 : index
      %c0_18 = arith.constant 0 : index
      %c0_19 = arith.constant 0 : index
      %25 = vector.load %arg4[%c3, %c0_18, %c0_19] : memref<9x1x256xf32, #tpu.memory_space<vmem>>, vector<1x1x256xf32>
      %26 = vector.shape_cast %25 : vector<1x1x256xf32> to vector<1x256xf32>
      %27 = vector.broadcast %26 : vector<1x256xf32> to vector<4x256xf32>
      %28 = arith.mulf %24, %27 : vector<4x256xf32>
      %c12 = arith.constant 12 : index
      %c0_20 = arith.constant 0 : index
      %29 = vector.load %arg6[%c12, %c0_20] : memref<36x256xf32, #tpu.memory_space<vmem>>, vector<4x256xf32>
      tpu.vector_store %arg6[%c12, %c0_20], %28 {strides = array<i32>} : memref<36x256xf32, #tpu.memory_space<vmem>>, vector<4x256xf32>,
      %c16 = arith.constant 16 : index
      %c0_21 = arith.constant 0 : index
      %30 = vector.load %arg6[%c16, %c0_21] : memref<36x256xf32, #tpu.memory_space<vmem>>, vector<4x256xf32>
      tpu.vector_store %arg6[%c16, %c0_21], %5 {strides = array<i32>} : memref<36x256xf32, #tpu.memory_space<vmem>>, vector<4x256xf32>,
      %c255_i32 = arith.constant 255 : i32
      %31 = tpu.dynamic_rotate %5 by %c255_i32 dim 1 : vector<4x256xf32>, i32 -> vector<4x256xf32>
      %c5 = arith.constant 5 : index
      %c0_22 = arith.constant 0 : index
      %c0_23 = arith.constant 0 : index
      %32 = vector.load %arg4[%c5, %c0_22, %c0_23] : memref<9x1x256xf32, #tpu.memory_space<vmem>>, vector<1x1x256xf32>
      %33 = vector.shape_cast %32 : vector<1x1x256xf32> to vector<1x256xf32>
      %34 = vector.broadcast %33 : vector<1x256xf32> to vector<4x256xf32>
      %35 = arith.mulf %31, %34 : vector<4x256xf32>
      %c20 = arith.constant 20 : index
      %c0_24 = arith.constant 0 : index
      %36 = vector.load %arg6[%c20, %c0_24] : memref<36x256xf32, #tpu.memory_space<vmem>>, vector<4x256xf32>
      tpu.vector_store %arg6[%c20, %c0_24], %35 {strides = array<i32>} : memref<36x256xf32, #tpu.memory_space<vmem>>, vector<4x256xf32>,
      %c241_i32 = arith.constant 241 : i32
      %37 = tpu.dynamic_rotate %5 by %c241_i32 dim 1 : vector<4x256xf32>, i32 -> vector<4x256xf32>
      %c6 = arith.constant 6 : index
      %c0_25 = arith.constant 0 : index
      %c0_26 = arith.constant 0 : index
      %38 = vector.load %arg4[%c6, %c0_25, %c0_26] : memref<9x1x256xf32, #tpu.memory_space<vmem>>, vector<1x1x256xf32>
      %39 = vector.shape_cast %38 : vector<1x1x256xf32> to vector<1x256xf32>
      %40 = vector.broadcast %39 : vector<1x256xf32> to vector<4x256xf32>
      %41 = arith.mulf %37, %40 : vector<4x256xf32>
      %c24 = arith.constant 24 : index
      %c0_27 = arith.constant 0 : index
      %42 = vector.load %arg6[%c24, %c0_27] : memref<36x256xf32, #tpu.memory_space<vmem>>, vector<4x256xf32>
      tpu.vector_store %arg6[%c24, %c0_27], %41 {strides = array<i32>} : memref<36x256xf32, #tpu.memory_space<vmem>>, vector<4x256xf32>,
      %c240_i32 = arith.constant 240 : i32
      %43 = tpu.dynamic_rotate %5 by %c240_i32 dim 1 : vector<4x256xf32>, i32 -> vector<4x256xf32>
      %c7 = arith.constant 7 : index
      %c0_28 = arith.constant 0 : index
      %c0_29 = arith.constant 0 : index
      %44 = vector.load %arg4[%c7, %c0_28, %c0_29] : memref<9x1x256xf32, #tpu.memory_space<vmem>>, vector<1x1x256xf32>
      %45 = vector.shape_cast %44 : vector<1x1x256xf32> to vector<1x256xf32>
      %46 = vector.broadcast %45 : vector<1x256xf32> to vector<4x256xf32>
      %47 = arith.mulf %43, %46 : vector<4x256xf32>
      %c28 = arith.constant 28 : index
      %c0_30 = arith.constant 0 : index
      %48 = vector.load %arg6[%c28, %c0_30] : memref<36x256xf32, #tpu.memory_space<vmem>>, vector<4x256xf32>
      tpu.vector_store %arg6[%c28, %c0_30], %47 {strides = array<i32>} : memref<36x256xf32, #tpu.memory_space<vmem>>, vector<4x256xf32>,
      %c239_i32 = arith.constant 239 : i32
      %49 = tpu.dynamic_rotate %5 by %c239_i32 dim 1 : vector<4x256xf32>, i32 -> vector<4x256xf32>
      %c8_31 = arith.constant 8 : index
      %c0_32 = arith.constant 0 : index
      %c0_33 = arith.constant 0 : index
      %50 = vector.load %arg4[%c8_31, %c0_32, %c0_33] : memref<9x1x256xf32, #tpu.memory_space<vmem>>, vector<1x1x256xf32>
      %51 = vector.shape_cast %50 : vector<1x1x256xf32> to vector<1x256xf32>
      %52 = vector.broadcast %51 : vector<1x256xf32> to vector<4x256xf32>
      %53 = arith.mulf %49, %52 : vector<4x256xf32>
      %c32 = arith.constant 32 : index
      %c0_34 = arith.constant 0 : index
      %54 = vector.load %arg6[%c32, %c0_34] : memref<36x256xf32, #tpu.memory_space<vmem>>, vector<4x256xf32>
      tpu.vector_store %arg6[%c32, %c0_34], %53 {strides = array<i32>} : memref<36x256xf32, #tpu.memory_space<vmem>>, vector<4x256xf32>,
      %c0_35 = arith.constant 0 : index
      %c0_36 = arith.constant 0 : index
      %55 = vector.load %arg6[%c0_35, %c0_36] : memref<36x256xf32, #tpu.memory_space<vmem>>, vector<36x256xf32>
      %cst = arith.constant dense<0.000000e+00> : vector<8x256xf32>
      %56 = tpu.matmul %0, %55, %cst {dimension_numbers = #tpu.dot_dimension_numbers<[1], [0], [0], [1], [0, 0, 1, 1], [], []>} : vector<8x36xf32>, vector<36x256xf32>, vector<8x256xf32> -> vector<8x256xf32>
      %57 = vector.broadcast %1 : vector<8x1xf32> to vector<8x256xf32>
      %58 = arith.addf %56, %57 : vector<8x256xf32>
      %59 = arith.negf %58 : vector<8x256xf32>
      %60 = math.exp %59 : vector<8x256xf32>
      %cst_37 = arith.constant 1.000000e+00 : f32
      %61 = vector.broadcast %cst_37 : f32 to vector<8x256xf32>
      %62 = arith.addf %61, %60 : vector<8x256xf32>
      %63 = arith.divf %61, %62 : vector<8x256xf32>
      %64 = vector.shape_cast %5 : vector<4x256xf32> to vector<4x1x256xf32>
      %65 = vector.shape_cast %63 : vector<8x256xf32> to vector<1x8x256xf32>
      %66 = vector.broadcast %64 : vector<4x1x256xf32> to vector<4x8x256xf32>
      %67 = vector.broadcast %65 : vector<1x8x256xf32> to vector<4x8x256xf32>
      %68 = arith.mulf %66, %67 : vector<4x8x256xf32>
      %cst_38 = arith.constant dense<0xFF800000> : vector<4x8xf32>
      %69 = vector.multi_reduction <maximumf>, %68, %cst_38 [2] : vector<4x8x256xf32> to vector<4x8xf32>
      %70 = arith.index_cast %arg7 : i32 to index
      %c0_39 = arith.constant 0 : index
      %c0_40 = arith.constant 0 : index
      %71 = vector.load %arg5[%70, %c0_39, %c0_40] : memref<4x4x8xf32, #tpu.memory_space<vmem>>, vector<1x4x8xf32>
      %72 = vector.shape_cast %71 : vector<1x4x8xf32> to vector<4x8xf32>
      %73 = vector.shape_cast %69 : vector<4x8xf32> to vector<1x4x8xf32>
      tpu.vector_store %arg5[%70, %c0_39, %c0_40], %73 {strides = array<i32>} : memref<4x4x8xf32, #tpu.memory_space<vmem>>, vector<1x4x8xf32>,
    }
    %c4_i32_3 = arith.constant 4 : i32
    return
  }
  func.func @transform_0(%arg0: i32) -> (i32, i32, i32) {
    %c0_i32 = arith.constant 0 : i32
    %c0_i32_0 = arith.constant 0 : i32
    %c0_i32_1 = arith.constant 0 : i32
    return %arg0, %c0_i32, %c0_i32_0 : i32, i32, i32
  }
  func.func @transform_1(%arg0: i32) -> (i32, i32) {
    %c0_i32 = arith.constant 0 : i32
    %c0_i32_0 = arith.constant 0 : i32
    %c0_i32_1 = arith.constant 0 : i32
    return %c0_i32, %c0_i32_0 : i32, i32
  }
  func.func @transform_2(%arg0: i32) -> (i32, i32) {
    %c0_i32 = arith.constant 0 : i32
    %c0_i32_0 = arith.constant 0 : i32
    %c0_i32_1 = arith.constant 0 : i32
    return %c0_i32, %c0_i32_0 : i32, i32
  }
  func.func @transform_3(%arg0: i32) -> (i32, i32, i32) {
    %c0_i32 = arith.constant 0 : i32
    %c0_i32_0 = arith.constant 0 : i32
    %c0_i32_1 = arith.constant 0 : i32
    %c0_i32_2 = arith.constant 0 : i32
    return %c0_i32, %c0_i32_0, %c0_i32_1 : i32, i32, i32
  }
  func.func @transform_4(%arg0: i32) -> (i32, i32, i32) {
    %c0_i32 = arith.constant 0 : i32
    %c0_i32_0 = arith.constant 0 : i32
    %c0_i32_1 = arith.constant 0 : i32
    return %arg0, %c0_i32, %c0_i32_0 : i32, i32, i32
  }
}

</mosaic_0001>

<bundles_post_ra>
// kernel: tpu_custom_call.1
= control target key start
LH: loop header
LB: loop body
LE: loop exit
PB: predicated region body
PF: predicated region fallthrough
CT: control target
= control target key end

     0   :  { %9 = vsyncpa [#allocation4], 0  ;;  %s801_s0 = inlined_call_operand.hbm [shape: f32[4,4,256], index: 0, kind: input, shape index: {}]   ;;  %s802_s1 = inlined_call_operand.vmem [shape: f32[8,36], index: 1, kind: input, shape index: {}]   ;;  %s803_s2 = inlined_call_operand.vmem [shape: f32[8,1], index: 2, kind: input, shape index: {}]   ;;  %s804_s3 = inlined_call_operand.hbm [shape: f32[9,1,256], index: 3, kind: input, shape index: {}]   ;;  %s805_s4 = inlined_call_operand.hbm [shape: f32[4,4,8], index: 4, kind: output, shape index: {}]  }
   0x1   :  { %10 = vsyncpa [#allocation7], 0 }
   0x2   :  { %11 = vsyncpa [#allocation5], 0  ;;  %s652_s15 = smov [#allocation3]  }
   0x3   :  { %s17_s16 = sshll.u32 %s652_s15, 4  ;;  %s18_s16 = int_to_ptr.vmem [resolvable:$true] %s17_s16 }
   0x4   :  { %s586_s17 = scalar_lea.vmem %s18_s16, 512  ;;  %p591_p1 = scmp.lt.s32.totalorder %s18_s16, %s18_s16 }
   0x5   :  { %p587_p0 = scmp.ne.s32.totalorder %s18_s16, %s586_s17  ;;  %p592_p2 = scmp.lt.s32.totalorder %s586_s17, %s586_s17 }
   0x7   :  { %p593_p3 = por %p592_p2, %p591_p1 }
   0x9   :  { %p594_p4 = pnand %p593_p3, %p587_p0 }
   0xb   :  { %597 = shalt.err (!%p594_p4)
}
   0xc   :  { %s653_s18 = smov 128   ;;  %s654_s19 = smov 8  }
   0xd   :  { %23 = dma.hbm_to_vmem [thread:$0]  %s801_s0, 512, %s18_s16, [#allocation4], %s653_s18, %s653_s18, %s654_s19  }
   0xe   :  { %s655_s22 = smov [#allocation6]  }
   0xf   :  { %s33_s23 = sshll.u32 %s655_s22, 4  ;;  %s34_s23 = int_to_ptr.vmem [resolvable:$true] %s33_s23 }
  0x10   :  { %s606_s24 = scalar_lea.vmem %s34_s23, 288  ;;  %p611_p6 = scmp.lt.s32.totalorder %s34_s23, %s34_s23 }
  0x11   :  { %p607_p5 = scmp.ne.s32.totalorder %s34_s23, %s606_s24  ;;  %p612_p7 = scmp.lt.s32.totalorder %s606_s24, %s606_s24 }
  0x13   :  { %p613_p8 = por %p612_p7, %p611_p6 }
  0x15   :  { %p614_p9 = pnand %p613_p8, %p607_p5 }
  0x17   :  { %617 = shalt.err (!%p614_p9)
}
  0x18   :  { %s656_s25 = smov 32   ;;  %s657_s26 = smov 2  }
  0x19   :  { %39 = dma.hbm_to_vmem [thread:$0]  %s804_s3, 288, %s34_s23, [#allocation7], %s656_s25, %s656_s25, %s657_s26  }
  0x1a   :  { %642 = dma.done.wait [#allocation4], 512  }
  0x1b   :  { %643 = vsyncadd [#allocation4], 4294966784 }
  0x1c   :  { %644 = dma.done.wait [#allocation7], 288  }
  0x1d   :  { %645 = vsyncadd [#allocation7], 4294967008  ;;  %v706_v0 = vld [vmem:[%s802_s1] sm:$0xff]  ;;  %s713_s6 = smov 0  }
  0x1e   :  { %v711_v1 = vld [vmem:[%s803_s2] sm:$0xff] }
  0x1f LB: > { %s539_s3 = sshll.u32 %s650_s6, 3  ;;  %s658_s8 = smov 111   ;;  %v665_v4 = vmov 0.0   ;;  %v667_v5 = vmov 0   ;;  %v65_v6 = vlaneseq  ;;  %v264_v11 = vld [vmem:[#allocation6 + $0x10] sm:$0x3]  ;;  %s650_s6 = sphi %s713_s6, %s53_s6  }
  0x20   : > { %s56_s7 = scalar_lea.vmem [#allocation3], %s539_s3  ;;  %s659_s1 = smov 112   ;;  %370 = vmatprep.mubr.f32.mxu0 %v665_v4  ;;  %568 = vset.pattern.permute.xlu0 %v667_v5  ;;  %v234_v12 = vld [vmem:[#allocation6 + $0xe] sm:$0x3]  ;;  %v180_v15 = vld [vmem:[#allocation6 + $0xa] sm:$0x3] }
  0x21   : > { %v719_v2 = vld [vmem:[%s56_s7] sm:$0xff]  ;;  %s660_s2 = smov 127   ;;  %s661_s9 = smov 113   ;;  %v733_v7 = vshrl.u32 %v65_v6, 7  ;;  %v735_v8 = vand.u32 127, %v65_v6  ;;  %vm299_vm4 = vcmask 1043456  }
  0x22   : > { %256 = vrot.lane.b32.xlu1 %v719_v2, %s658_s8  ;;  %170 = vst [vmem:[#allocation2 + $0x48] sm:$0xf] %v719_v2  ;;  %226 = vrot.lane.b32.xlu0 %v719_v2, %s659_s1  ;;  %v59_v3 = vcombine.high %v719_v2, %v719_v2  ;;  %s662_s10 = smov 1   ;;  %s663_s11 = smov 16   ;;  %v210_v32 = vld [vmem:[#allocation6 + $0xc] sm:$0x3] }
  0x23   : > { %s664_s12 = smov 15   ;;  %s666_s13 = smov 17   ;;  %v738_v9 = vsub.s32 0, %v733_v7  ;;  %v741_v10 = vsub.s32 1, %v733_v7  ;;  %vm260_vm0 = vcmp.lt.s32.totalorder %v735_v8, 111  ;;  %vm230_vm1 = vcmp.lt.s32.totalorder %v735_v8, 112 }
  0x24   : > { %171 = vst [vmem:[#allocation2 + $0x28] sm:$0xf] %v59_v3  ;;  %vm176_vm2 = vcmp.lt.s32.totalorder %v735_v8, 127  ;;  %vm206_vm3 = vcmp.lt.s32.totalorder %v735_v8, 113  ;;  %v148_v43 = vld [vmem:[#allocation6 + $0x6] sm:$0x3] }
  0x25   : > { %v269_v16 = vrot.slane %v264_v11, %v738_v9  ;;  %v273_v17 = vrot.slane %v264_v11, %v741_v10  ;;  %v239_v18 = vrot.slane %v234_v12, %v738_v9  ;;  %v243_v19 = vrot.slane %v234_v12, %v741_v10  ;;  %v94_v56 = vld [vmem:[#allocation6 + $0x2] sm:$0x3]  ;;  %v124_v4 = vld [vmem:[#allocation6 + $0x4] sm:$0x3]  ;;  %s538_s14 = sshll.u32 %s650_s6, 2  ;;  %s53_s6 = sadd.s32 1, %s650_s6  }
  0x26   : > { %258 = vrot.lane.b32.xlu1 %v59_v3, %s658_s8  ;;  %228 = vrot.lane.b32.xlu0 %v59_v3, %s659_s1  ;;  %v185_v22 = vrot.slane %v180_v15, %v738_v9  ;;  %v189_v23 = vrot.slane %v180_v15, %v741_v10  ;;  %v215_v41 = vrot.slane %v210_v32, %v738_v9  ;;  %vm144_vm5 = vcmp.lt.s32.totalorder %v735_v8, 1  ;;  %s501_s15 = scalar_lea.vmem [#allocation8], %s538_s14  ;;  %p50_p10 = scmp.ge.s32.totalorder %s53_s6, 4  }
  0x27   : > { %v219_v42 = vrot.slane %v210_v32, %v741_v10  ;;  %v153_v52 = vrot.slane %v148_v43, %v738_v9  ;;  %v157_v53 = vrot.slane %v148_v43, %v741_v10  ;;  %vm90_vm6 = vcmp.lt.s32.totalorder %v735_v8, 16  ;;  %s669_s16 = smov (%p50_p10), [#allocation8]  }
  0x28   : > { %v99_v63 = vrot.slane %v94_v56, %v738_v9  ;;  %vm120_vm7 = vcmp.lt.s32.totalorder %v735_v8, 15  ;;  %vm67_vm8 = vcmp.lt.s32.totalorder %v735_v8, 17  ;;  %vm295_vm9 = vcmask 293888   ;;  %s509_s17 = sshll.u32 (%p50_p10), %s669_s16, 4  ;;  %s510_s17 = int_to_ptr.vmem [resolvable:$true] %s509_s17 }
  0x29   : > { %vm493_vm10 = vcmask 1041409   ;;  %vm495_vm11 = vcmask 1042434   ;;  %vm497_vm12 = vcmask 1043459   ;;  %vm502_vm13 = vcmask 60416   ;;  %s618_s18 = scalar_lea.vmem (%p50_p10), %s510_s17, 256  ;;  %p623_p12 = scmp.lt.s32.totalorder (%p50_p10), %s510_s17, %s510_s17 }
  0x2a   : > { %174 = vrot.lane.b32.xlu1 %v59_v3, %s660_s2  ;;  %172 = vrot.lane.b32.xlu0 %v719_v2, %s660_s2  ;;  %p619_p11 = scmp.ne.s32.totalorder (%p50_p10), %s510_s17, %s618_s18  ;;  %p624_p13 = scmp.lt.s32.totalorder (%p50_p10), %s618_s18, %s618_s18 }
  0x2c   :  { %p625_p0 = por (%p50_p10), %p624_p13, %p623_p12 }
  0x2e   : > { %204 = vrot.lane.b32.xlu1 %v59_v3, %s661_s9  ;;  %202 = vrot.lane.b32.xlu0 %v719_v2, %s661_s9  ;;  %p626_p1 = pnand (%p50_p10), %p625_p0, %p619_p11 }
  0x32   : > { %142 = vrot.lane.b32.xlu1 %v59_v3, %s662_s10  ;;  %140 = vrot.lane.b32.xlu0 %v719_v2, %s662_s10 }
  0x36   : > { %88 = vrot.lane.b32.xlu1 %v59_v3, %s663_s11  ;;  %86 = vrot.lane.b32.xlu0 %v719_v2, %s663_s11 }
  0x3a   : > { %118 = vrot.lane.b32.xlu1 %v59_v3, %s664_s12  ;;  %116 = vrot.lane.b32.xlu0 %v719_v2, %s664_s12 }
  0x3e   : > { %63 = vrot.lane.b32.xlu1 %v59_v3, %s666_s13  ;;  %61 = vrot.lane.b32.xlu0 %v719_v2, %s666_s13  ;;  %v103_v3 = vrot.slane %v94_v56, %v741_v10 }
  0x42   : > { %292 = vperm.xlu0 %568, %v711_v1  }
  0x94   : > { %v257_v13 = vpop.permute.xlu1 %256  ;;  %v227_v14 = vpop.permute.xlu0 %226 }
  0x98   : > { %v259_v20 = vpop.permute.xlu1 %258  ;;  %v229_v21 = vpop.permute.xlu0 %228 }
  0x99   : > { %v261_v24 = vsel %vm260_vm0, %v257_v13, %v259_v20  ;;  %v262_v25 = vsel %vm260_vm0, %v259_v20, %v257_v13  ;;  %v231_v26 = vsel %vm230_vm1, %v227_v14, %v229_v21  ;;  %v232_v27 = vsel %vm230_vm1, %v229_v21, %v227_v14  ;;  %v70_v21 = vld [vmem:[#allocation6] sm:$0x3] }
  0x9a   : > { %v276_v28 = vmul.f32 %v269_v16, %v261_v24  ;;  %v277_v29 = vmul.f32 %v273_v17, %v262_v25  ;;  %v246_v30 = vmul.f32 %v239_v18, %v231_v26  ;;  %v247_v31 = vmul.f32 %v243_v19, %v232_v27 }
  0x9b   : > { %v129_v17 = vrot.slane %v124_v4, %v738_v9  ;;  %v133_v18 = vrot.slane %v124_v4, %v741_v10  ;;  %v75_v32 = vrot.slane %v70_v21, %v738_v9 }
  0x9c   : > { %278 = vst [vmem:[#allocation2 + $0x40] sm:$0xf] %v276_v28  ;;  %279 = vst [vmem:[#allocation2 + $0x38] sm:$0xf] %v277_v29  ;;  %v250_v33 = vrot.slane %v246_v30, 4  ;;  %v251_v34 = vrot.slane %v247_v31, 4  ;;  %v175_v35 = vpop.permute.xlu1 %174  ;;  %v173_v36 = vpop.permute.xlu0 %172 }
  0x9d   : > { %v177_v37 = vsel %vm176_vm2, %v173_v36, %v175_v35  ;;  %v178_v38 = vsel %vm176_vm2, %v175_v35, %v173_v36 }
  0x9e   : > { %254 = vst [vmem:[#allocation2 + $0x8] sm:$0xf0] %v250_v33  ;;  %255 = vst [vmem:[#allocation2 + $0x20] sm:$0xf0] %v251_v34  ;;  %v192_v39 = vmul.f32 %v185_v22, %v177_v37  ;;  %v193_v40 = vmul.f32 %v189_v23, %v178_v38  ;;  %v79_v33 = vrot.slane %v70_v21, %v741_v10 }
  0xa0   : > { %v196_v44 = vrot.slane %v192_v39, 4  ;;  %v197_v45 = vrot.slane %v193_v40, 4  ;;  %v205_v46 = vpop.permute.xlu1 %204  ;;  %v203_v47 = vpop.permute.xlu0 %202 }
  0xa1   : > { %v207_v48 = vsel %vm206_vm3, %v203_v47, %v205_v46  ;;  %v208_v49 = vsel %vm206_vm3, %v205_v46, %v203_v47 }
  0xa2   : > { %200 = vst [vmem:[#allocation2 + $0x48] sm:$0xf0] %v196_v44  ;;  %201 = vst [vmem:[#allocation2 + $0x28] sm:$0xf0] %v197_v45  ;;  %v222_v50 = vmul.f32 %v215_v41, %v207_v48  ;;  %v223_v51 = vmul.f32 %v219_v42, %v208_v49 }
  0xa3   : > { %v289_v54 = vld [vmem:[#allocation2 + $0x38] sm:$0xf]  ;;  %v288_v55 = vld [vmem:[#allocation2 + $0x40] sm:$0xf] }
  0xa4   : > { %224 = vst [vmem:[#allocation2 + $0x8] sm:$0xf] %v222_v50  ;;  %225 = vst [vmem:[#allocation2 + $0x20] sm:$0xf] %v223_v51  ;;  %533 = vmatprep.subr.msk.mxu0 %vm299_vm4, %v289_v54  ;;  %v143_v57 = vpop.permute.xlu1 %142  ;;  %v141_v58 = vpop.permute.xlu0 %140  ;;  %v668_v51 = vmov 1966171168  }
  0xa5   : > { %v145_v59 = vsel %vm144_vm5, %v141_v58, %v143_v57  ;;  %v146_v60 = vsel %vm144_vm5, %v143_v57, %v141_v58  ;;  %534 = vmatpush1.msk.msra.mxu0 %vm299_vm4, %v288_v55 }
  0xa6   : > { %v160_v61 = vmul.f32 %v153_v52, %v146_v60  ;;  %v161_v62 = vmul.f32 %v157_v53, %v145_v59  ;;  %v390_v52 = vunpack.c.l.s4 %v668_v51 }
  0xa8   : > { %v164_v5 = vrot.slane %v160_v61, 4  ;;  %v165_v6 = vrot.slane %v161_v62, 4  ;;  %v89_v11 = vpop.permute.xlu1 %88  ;;  %v87_v12 = vpop.permute.xlu0 %86  ;;  %v391_v53 = vunpack.c.0.s8 %v390_v52 }
  0xa9   : > { %v91_v13 = vsel %vm90_vm6, %v87_v12, %v89_v11  ;;  %v92_v14 = vsel %vm90_vm6, %v89_v11, %v87_v12  ;;  %v285_v28 = vld [vmem:[#allocation2 + $0x28] sm:$0xff] }
  0xaa   : > { %168 = vst [vmem:[#allocation2 + $0x18] sm:$0xf0] %v164_v5  ;;  %169 = vst [vmem:[#allocation2 + $0x10] sm:$0xf0] %v165_v6  ;;  %v106_v15 = vmul.f32 %v99_v63, %v92_v14  ;;  %v107_v16 = vmul.f32 %v103_v3, %v91_v13  ;;  %v284_v31 = vld [vmem:[#allocation2 + $0x48] sm:$0xff]  ;;  %v394_v54 = vsub.s32 %v391_v53, %v733_v7 }
  0xab   : > { %v287_v19 = vld [vmem:[#allocation2 + $0x20] sm:$0xff]  ;;  %v286_v20 = vld [vmem:[#allocation2 + $0x8] sm:$0xff] }
  0xac   : > { %v110_v22 = vrot.slane %v106_v15, 4  ;;  %v111_v23 = vrot.slane %v107_v16, 4  ;;  %v119_v24 = vpop.permute.xlu1 %118  ;;  %330 = vmatprep.subr.mxu0 %v287_v19  ;;  %v117_v25 = vpop.permute.xlu0 %116  ;;  %v395_v58 = vrot.slane %v719_v2, %v394_v54 }
  0xad   : > { %v121_v26 = vsel %vm120_vm7, %v117_v25, %v119_v24  ;;  %v122_v27 = vsel %vm120_vm7, %v119_v24, %v117_v25  ;;  %331 = vmatpush1.msra.mxu0 %v286_v20 }
  0xae   : > { %114 = vst [vmem:[#allocation2 + $0x30] sm:$0xf0] %v110_v22  ;;  %115 = vst [vmem:[#allocation2] sm:$0xf0] %v111_v23  ;;  %v136_v29 = vmul.f32 %v129_v17, %v122_v27  ;;  %v137_v30 = vmul.f32 %v133_v18, %v121_v26  ;;  %332 = vmatprep.subr.mxu0 %v285_v28  ;;  %v396_v60 = vcombine.high %v395_v58, %v395_v58 }
  0xaf   : > { %333 = vmatpush1.msra.mxu0 %v284_v31  ;;  %v403_v62 = vrot.slane %v395_v58, %v394_v54 }
  0xb0   : > { %138 = vst [vmem:[#allocation2 + $0x18] sm:$0xf] %v136_v29  ;;  %139 = vst [vmem:[#allocation2 + $0x10] sm:$0xf] %v137_v30  ;;  %v64_v34 = vpop.permute.xlu1 %63  ;;  %v62_v35 = vpop.permute.xlu0 %61  ;;  %v410_v61 = vrot.slane %v396_v60, %v394_v54 }
  0xb1   : > { %v68_v36 = vsel %vm67_vm8, %v62_v35, %v64_v34  ;;  %v69_v37 = vsel %vm67_vm8, %v64_v34, %v62_v35  ;;  %v411_v3 = vcombine.high %v403_v62, %v403_v62  ;;  %v416_v6 = vrot.slane %v403_v62, %v738_v9 }
  0xb2   : > { %v82_v38 = vmul.f32 %v75_v32, %v69_v37  ;;  %v83_v39 = vmul.f32 %v79_v33, %v68_v36  ;;  %v412_v63 = vcombine.high %v410_v61, %v410_v61  ;;  %v424_v4 = vrot.slane %v410_v61, %v738_v9 }
  0xb3   : > { %v428_v5 = vrot.slane %v410_v61, %v741_v10  ;;  %v420_v11 = vrot.slane %v403_v62, %v741_v10  ;;  %v436_v2 = vrot.slane %v411_v3, %v741_v10  ;;  %v432_v16 = vrot.slane %v411_v3, %v738_v9 }
  0xb4   : > { %84 = vst [vmem:[#allocation2 + $0x30] sm:$0xf] %v82_v38  ;;  %85 = vst [vmem:[#allocation2] sm:$0xf] %v83_v39  ;;  %v444_v13 = vrot.slane %v412_v63, %v741_v10  ;;  %v440_v15 = vrot.slane %v412_v63, %v738_v9  ;;  %v479_v9 = vsub.s32 %v735_v8, %v733_v7 }
  0xb7   : > { %v283_v40 = vld [vmem:[#allocation2 + $0x10] sm:$0xff]  ;;  %v282_v41 = vld [vmem:[#allocation2 + $0x18] sm:$0xff] }
  0xb8   : > { %334 = vmatprep.subr.mxu0 %v283_v40 }
  0xb9   : > { %335 = vmatpush1.msra.mxu0 %v282_v41 }
  0xbb   : > { %v281_v42 = vld [vmem:[#allocation2] sm:$0xff]  ;;  %v280_v43 = vld [vmem:[#allocation2 + $0x30] sm:$0xff] }
  0xbc   : > { %336 = vmatprep.subr.mxu0 %v281_v42 }
  0xbd   : > { %337 = vmatpush1.msra.mxu0 %v280_v43  ;;  %v293_v44 = vpop.permute.xlu0 %292 }
  0xbe   : > { %535 = vmatmul.mubr.msk.f32.vlgmr.msra.gmra.mxu0 %vm295_vm9, %v706_v0 }
 0x17e   : > { %v372_v45 = vpop.f32.mrf.mxu0 }
 0x17f   : > { %v373_v46 = vadd.f32 %v372_v45, %v293_v44 }
 0x180   : > { %v374_v47 = vpop.f32.mrf.mxu0 }
 0x181   : > { %v536_v48 = vmul.f32 -1.442695, %v373_v46  ;;  %v375_v49 = vadd.f32 %v374_v47, %v293_v44 }
 0x183   : > { %570 = vpow2.f32 %v536_v48  ;;  %v537_v50 = vmul.f32 -1.442695, %v375_v49 }
 0x185   : > { %572 = vpow2.f32 %v537_v50 }
 0x190   : > { %v571_v55 = vpop.eup %570 }
 0x191   : > { %v383_v56 = vadd.f32 1.0, %v571_v55 }
 0x192   : > { %v573_v57 = vpop.eup %572 }
 0x193   : > { %574 = vrcp.f32 %v383_v56  ;;  %v384_v59 = vadd.f32 1.0, %v573_v57 }
 0x195   : > { %576 = vrcp.f32 %v384_v59 }
 0x1a0   : > { %v575_v12 = vpop.eup %574 }
 0x1a1   : > { %v455_v17 = vmul.f32 %v575_v12, %v424_v4  ;;  %v453_v19 = vmul.f32 %v575_v12, %v416_v6  ;;  %v459_v25 = vmul.f32 %v575_v12, %v440_v15  ;;  %v457_v26 = vmul.f32 %v575_v12, %v432_v16 }
 0x1a2   : > { %v577_v14 = vpop.eup %576 }
 0x1a3   : > { %v456_v18 = vmul.f32 %v577_v14, %v428_v5  ;;  %v454_v20 = vmul.f32 %v577_v14, %v420_v11  ;;  %v460_v23 = vmul.f32 %v577_v14, %v444_v13  ;;  %v458_v24 = vmul.f32 %v577_v14, %v436_v2 }
 0x1a5   : > { %v464_v21 = vmax.f32 %v455_v17, %v456_v18  ;;  %v461_v22 = vmax.f32 %v453_v19, %v454_v20  ;;  %v470_v27 = vmax.f32 %v459_v25, %v460_v23  ;;  %v467_v10 = vmax.f32 %v457_v26, %v458_v24 }
 0x1a7   : > { %465 = vmax.xlane.f32.xlu0 %v464_v21  ;;  %462 = vmax.xlane.f32.xlu1 %v461_v22 }
 0x1ab   : > { %471 = vmax.xlane.f32.xlu0 %v470_v27  ;;  %468 = vmax.xlane.f32.xlu1 %v467_v10 }
 0x230   : > { %v466_v28 = vpop.xlane.xlu0 %465  ;;  %v463_v29 = vpop.xlane.xlu1 %462 }
 0x231   : > { %v484_v30 = vrot.slane %v466_v28, %v479_v9  ;;  %v480_v31 = vrot.slane %v463_v29, %v479_v9 }
 0x233   : > { %v494_v36 = vsel %vm493_vm10, %v484_v30, %v480_v31 }
 0x234   : > { %v472_v32 = vpop.xlane.xlu0 %471  ;;  %v469_v33 = vpop.xlane.xlu1 %468 }
 0x235   : > { %v492_v34 = vrot.slane %v472_v32, %v479_v9  ;;  %v488_v35 = vrot.slane %v469_v33, %v479_v9  ;;  %52 = sbr.rel (!%p50_p10) target bundleno = 31 (0x1f), region = 60 }
 0x237   : > { %v496_v37 = vsel %vm495_vm11, %v488_v35, %v494_v36 }
 0x238   : > { %v498_v38 = vsel %vm497_vm12, %v492_v34, %v496_v37 }
 0x239   : > { %503 = vst.msk [vmem:[%s501_s15] sm:$0xf] %vm502_vm13, %v498_v38 }
 0x23a   :  { %629 = shalt.err (!%p626_p1)
}
 0x23b   :  { %s670_s19 = smov 64   ;;  %s671_s20 = smov 4  }
 0x23c   :  { %515 = dma.vmem_to_hbm [thread:$0]  %s510_s17, 256, %s805_s4, [#allocation5], %s670_s19, %s670_s19, %s671_s20  }
 0x23d   :  { %646 = dma.done.wait [#allocation5], 256  }
 0x23e   :  { %647 = vsyncadd [#allocation5], 4294967040 }
 0x23f   :  { %519 = vsyncpa [#allocation4], 1 }
 0x240   :  { %520 = vsyncpa [#allocation7], 1 }
 0x241   :  { %521 = vsyncpa [#allocation5], 1 }

</bundles_post_ra>
